<compile_context>
chip_gen: v7x
topology: tpu7x:2x2x1
jax: 0.10.0
libtpu: 0.0.40
codegen_flags: <defaults>
</compile_context>

<pallas_src>
import functools

import numpy as np

import jax
import jax.numpy as jnp
from jax.experimental import pallas as pl
from jax.experimental.pallas import tpu as pltpu

KH = KW = 5
PAD = 2


def _round_up(a, b):
    return -(-a // b) * b


def _fused_conv_block_kernel(x_ref, w1_ref, b1_ref, w2_ref, b2_ref, o_ref,
                             lhs1, lhs2, *, H, W, C1, C2, BT, K1SEG, K2SEG):
    """One batch tile (BT images) per grid step; both conv+BN+ReLU stages fused.

    x_ref:  (BT*H, W*C1)         input rows, images stacked along rows,
                                 channels folded into lanes
    w1_ref: (KH*K1SEG, W*C2)     stage-1 dy-folded block-Toeplitz slab (bf16,
                                 BN scale folded in)
    b1_ref: (1, W*C2)            stage-1 fused bias (conv bias + BN), f32
    w2_ref: (KH*K2SEG, W*C2)     stage-2 slab (bf16)
    b2_ref: (1, W*C2)            stage-2 fused bias, f32
    o_ref:  (BT*H, W*C2)         output, lane-dense last dim
    lhs1:   VMEM (BT*H, KH*K1SEG) bf16   stage-1 im2row scratch
    lhs2:   VMEM (BT*H, KH*K2SEG) bf16   stage-2 im2row scratch
    """
    # Zero both im2row scratches (halo columns/rows must be zero; interiors are
    # fully overwritten below).  See header for why this is done every step.
    lhs1[...] = jnp.zeros_like(lhs1)
    lhs2[...] = jnp.zeros_like(lhs2)

    # ---- stage 1: scatter dy-shifted copies of the input into the folded LHS.
    for b in range(BT):
        for dy in range(KH):
            y0 = max(0, PAD - dy)
            y1 = min(H, H + PAD - dy)
            s0, s1 = y0 + dy - PAD, y1 + dy - PAD
            c0 = dy * K1SEG + PAD * C1
            lhs1[b * H + y0:b * H + y1, c0:c0 + W * C1] = (
                x_ref[b * H + s0:b * H + s1, :].astype(jnp.bfloat16))

    # One GEMM: (BT*H, KH*K1SEG) @ (KH*K1SEG, W*C2), bf16 in, f32 accumulate.
    y = jnp.dot(lhs1[...], w1_ref[...], preferred_element_type=jnp.float32)
    y = jnp.maximum(y + b1_ref[...], 0.0)            # fused BN bias + ReLU (f32)

    # ---- stage 2: scatter the stage-1 activation the same way.
    y_bf = y.astype(jnp.bfloat16)
    for b in range(BT):
        for dy in range(KH):
            y0 = max(0, PAD - dy)
            y1 = min(H, H + PAD - dy)
            s0, s1 = y0 + dy - PAD, y1 + dy - PAD
            c0 = dy * K2SEG + PAD * C2
            lhs2[b * H + y0:b * H + y1, c0:c0 + W * C2] = y_bf[b * H + s0:b * H + s1, :]

    acc = jnp.dot(lhs2[...], w2_ref[...], preferred_element_type=jnp.float32)
    o_ref[...] = jnp.maximum(acc + b2_ref[...], 0.0).astype(o_ref.dtype)


def fused_conv_block(x2d, w1t, b1l, w2t, b2l, *, H, W, C1, C2, BT, K1SEG, K2SEG):
    """x2d: (Npad*H, W*C1) -> (Npad*H, W*C2); both conv stages in one pallas_call."""
    rows = x2d.shape[0]
    assert rows % (BT * H) == 0, (rows, BT, H)
    nsteps = rows // (BT * H)
    nout = W * C2
    kernel = functools.partial(_fused_conv_block_kernel, H=H, W=W, C1=C1, C2=C2,
                               BT=BT, K1SEG=K1SEG, K2SEG=K2SEG)
    return pl.pallas_call(
        kernel,
        out_shape=jax.ShapeDtypeStruct((rows, nout), jnp.float32),
        grid=(nsteps,),
        in_specs=[
            pl.BlockSpec((BT * H, W * C1), lambda i: (i, 0)),
            pl.BlockSpec((KH * K1SEG, nout), lambda i: (0, 0)),
            pl.BlockSpec((1, nout), lambda i: (0, 0)),
            pl.BlockSpec((KH * K2SEG, nout), lambda i: (0, 0)),
            pl.BlockSpec((1, nout), lambda i: (0, 0)),
        ],
        out_specs=pl.BlockSpec((BT * H, nout), lambda i: (i, 0)),
        scratch_shapes=[
            pltpu.VMEM((BT * H, KH * K1SEG), jnp.bfloat16),
            pltpu.VMEM((BT * H, KH * K2SEG), jnp.bfloat16),
        ],
        compiler_params=pltpu.CompilerParams(dimension_semantics=("parallel",)),
    )(x2d, w1t, b1l, w2t, b2l)


# ----------------------------- host-side packing -----------------------------

def _init_conv_params(key, in_ch, out_ch):
    """PyTorch-style uniform(-k, k), k = 1/sqrt(fan_in).  Weight OIHW."""
    kw_, kb = jax.random.split(key)
    fan_in = in_ch * KH * KW
    bound = 1.0 / float(np.sqrt(fan_in))
    w = jax.random.uniform(kw_, (out_ch, in_ch, KH, KW), jnp.float32, -bound, bound)
    b = jax.random.uniform(kb, (out_ch,), jnp.float32, -bound, bound)
    return w, b


def _fold_bn(conv_bias, gamma, beta, running_mean, running_var, eps=1e-5):
    scale = gamma / jnp.sqrt(running_var + eps)
    bias = scale * (conv_bias - running_mean) + beta
    return scale, bias


def _toeplitz_weights(w_oihw, w_spatial, kseg):
    """(O, I, KH, KW) -> (KH*kseg, W*O) dy-folded block-Toeplitz slab.

    slab[dy*kseg + (x+dx)*I + ci, x*O + co] = w[co, ci, dy, dx]
    so:  out2d = lhs @ slab   with   lhs[y, dy*kseg + k] = xpad2d[y+dy, k].
    Segments are zero-padded from WP*I up to kseg (multiple of 128).
    """
    o, i, kh, kw_ = w_oihw.shape
    w_np = np.transpose(np.asarray(w_oihw, np.float32), (2, 3, 1, 0))  # (KH,KW,I,O)
    slab = np.zeros((kh * kseg, w_spatial * o), np.float32)
    for dy in range(kh):
        for dx in range(kw_):
            for x in range(w_spatial):
                r0 = dy * kseg + (x + dx) * i
                slab[r0:r0 + i, x * o:(x + 1) * o] = w_np[dy, dx]
    return jnp.asarray(slab)


class ConvPallas:
    """JAX/Pallas equivalent of the PyTorch `Conv` module (dropout=False,
    eval-mode BatchNorm with freshly-initialized running stats)."""

    def __init__(self, in_ch, out_ch, key, batch_tile=8):
        self.in_ch, self.out_ch = in_ch, out_ch
        self.batch_tile = batch_tile   # images per grid step (16 also fine on v6e/v7x)
        k1, k2 = jax.random.split(key)
        self.w1, self.b1 = _init_conv_params(k1, in_ch, out_ch)
        self.w2, self.b2 = _init_conv_params(k2, out_ch, out_ch)
        ones = jnp.ones((out_ch,), jnp.float32)
        zeros = jnp.zeros((out_ch,), jnp.float32)
        # BN eval mode, fresh stats: gamma=1, beta=0, mean=0, var=1.
        self.scale1, self.bias1 = _fold_bn(self.b1, ones, zeros, zeros, ones)
        self.scale2, self.bias2 = _fold_bn(self.b2, ones, zeros, zeros, ones)
        # Fold BN scale into the conv weights (kernel only adds bias + ReLU).
        self._w1_scaled = self.w1 * self.scale1[:, None, None, None]
        self._w2_scaled = self.w2 * self.scale2[:, None, None, None]
        self._packed_cache = {}   # keyed by spatial width W

    def _packed(self, w_spatial):
        if w_spatial not in self._packed_cache:
            k1seg = _round_up((w_spatial + 2 * PAD) * self.in_ch, 128)
            k2seg = _round_up((w_spatial + 2 * PAD) * self.out_ch, 128)
            w1t = _toeplitz_weights(self._w1_scaled, w_spatial, k1seg).astype(jnp.bfloat16)
            w2t = _toeplitz_weights(self._w2_scaled, w_spatial, k2seg).astype(jnp.bfloat16)
            b1l = jnp.tile(self.bias1, w_spatial).reshape(1, w_spatial * self.out_ch)
            b2l = jnp.tile(self.bias2, w_spatial).reshape(1, w_spatial * self.out_ch)
            self._packed_cache[w_spatial] = (w1t, b1l, w2t, b2l, k1seg, k2seg)
        return self._packed_cache[w_spatial]

    def __call__(self, x_nchw):
        n, c, h, w = x_nchw.shape
        assert c == self.in_ch, (c, self.in_ch)
        w1t, b1l, w2t, b2l, k1seg, k2seg = self._packed(w)
        bt = min(self.batch_tile, n)
        assert (bt * h) % 8 == 0, "batch_tile * H must be a multiple of 8"
        n_pad = _round_up(n, bt)
        # NCHW -> NHWC -> lane-dense row-stacked (Npad*H, W*Cin)
        x_nhwc = jnp.transpose(x_nchw, (0, 2, 3, 1))
        if n_pad != n:
            pad = jnp.zeros((n_pad - n, h, w, c), x_nhwc.dtype)
            x_nhwc = jnp.concatenate([x_nhwc, pad], axis=0)
        x2d = x_nhwc.reshape(n_pad * h, w * c)
        y2d = fused_conv_block(x2d, w1t, b1l, w2t, b2l,
                               H=h, W=w, C1=c, C2=self.out_ch, BT=bt,
                               K1SEG=k1seg, K2SEG=k2seg)
        y = y2d[:n * h].reshape(n, h, w, self.out_ch)
        return jnp.transpose(y, (0, 3, 1, 2))                 # NHWC -> NCHW


def _reference(x_nchw, mod: ConvPallas):
    """Pure-JAX f32 reference (lax conv) for a correctness check."""
    def block(x, w_oihw, scale, bias):
        y = jax.lax.conv_general_dilated(
            x, w_oihw, window_strides=(1, 1), padding=((PAD, PAD), (PAD, PAD)),
            dimension_numbers=("NCHW", "OIHW", "NCHW"))
        y = y * scale[None, :, None, None] + bias[None, :, None, None]
        return jnp.maximum(y, 0.0)
    y = block(x_nchw, mod.w1, mod.scale1, mod.bias1)
    return block(y, mod.w2, mod.scale2, mod.bias2)


if __name__ == "__main__":
    key = jax.random.PRNGKey(0)
    k_param, k_x = jax.random.split(key)

    in_ch, out_ch = 4, 8
    x = jax.random.normal(k_x, (2, in_ch, 16, 16), jnp.float32)   # NCHW

    mod = ConvPallas(in_ch, out_ch, k_param)
    out = jax.block_until_ready(mod(x))

    ref = jax.block_until_ready(_reference(x, mod))
    assert out.shape == (2, out_ch, 16, 16), out.shape
    err = float(jnp.max(jnp.abs(out - ref)))
    # bf16 matmul operands -> looser tolerance than the f32 reference.
    assert jnp.allclose(out, ref, atol=5e-2, rtol=5e-2), err

    print("KERNEL_OK")
</pallas_src>

<mosaic_0001>
module attributes {stable_mosaic.version = 11 : i64} {
  func.func @_fused_conv_block_kernel(%arg0: i32, %arg1: memref<32x64xf32, #tpu.memory_space<vmem>>, %arg2: memref<640x128xbf16, #tpu.memory_space<vmem>>, %arg3: memref<1x128xf32, #tpu.memory_space<vmem>>, %arg4: memref<1280x128xbf16, #tpu.memory_space<vmem>>, %arg5: memref<1x128xf32, #tpu.memory_space<vmem>>, %arg6: memref<32x128xf32, #tpu.memory_space<vmem>>, %arg7: memref<32x640xbf16, #tpu.memory_space<vmem>>, %arg8: memref<32x1280xbf16, #tpu.memory_space<vmem>>) attributes {dimension_semantics = [#tpu.dimension_semantics<parallel>], iteration_bounds = array<i64: 1>, scalar_prefetch = 0 : i64, scratch_operands = 2 : i64, tpu.core_type = #tpu.core_type<tc>, window_params = [{transform_indices = @transform_0, window_bounds = array<i64: 32, 64>}, {pipeline_mode = #tpu.pipeline_mode<synchronous>, transform_indices = @transform_1, window_bounds = array<i64: 640, 128>}, {pipeline_mode = #tpu.pipeline_mode<synchronous>, transform_indices = @transform_2, window_bounds = array<i64: 1, 128>}, {pipeline_mode = #tpu.pipeline_mode<synchronous>, transform_indices = @transform_3, window_bounds = array<i64: 1280, 128>}, {pipeline_mode = #tpu.pipeline_mode<synchronous>, transform_indices = @transform_4, window_bounds = array<i64: 1, 128>}, {transform_indices = @transform_5, window_bounds = array<i64: 32, 128>}]} {
    %cst = arith.constant 0.000000e+00 : bf16
    %0 = vector.broadcast %cst : bf16 to vector<32x640xbf16>
    %c0 = arith.constant 0 : index
    %c0_0 = arith.constant 0 : index
    %1 = vector.load %arg7[%c0, %c0_0] : memref<32x640xbf16, #tpu.memory_space<vmem>>, vector<32x640xbf16>
    tpu.vector_store %arg7[%c0, %c0_0], %0 {strides = array<i32>} : memref<32x640xbf16, #tpu.memory_space<vmem>>, vector<32x640xbf16>,
    %cst_1 = arith.constant 0.000000e+00 : bf16
    %2 = vector.broadcast %cst_1 : bf16 to vector<32x1280xbf16>
    %c0_2 = arith.constant 0 : index
    %c0_3 = arith.constant 0 : index
    %3 = vector.load %arg8[%c0_2, %c0_3] : memref<32x1280xbf16, #tpu.memory_space<vmem>>, vector<32x1280xbf16>
    tpu.vector_store %arg8[%c0_2, %c0_3], %2 {strides = array<i32>} : memref<32x1280xbf16, #tpu.memory_space<vmem>>, vector<32x1280xbf16>,
    %c0_4 = arith.constant 0 : index
    %c0_5 = arith.constant 0 : index
    %4 = vector.load %arg1[%c0_4, %c0_5] : memref<32x64xf32, #tpu.memory_space<vmem>>, vector<14x64xf32>
    %5 = arith.truncf %4 : vector<14x64xf32> to vector<14x64xbf16>
    %c2 = arith.constant 2 : index
    %c8 = arith.constant 8 : index
    %6 = vector.load %arg7[%c2, %c8] : memref<32x640xbf16, #tpu.memory_space<vmem>>, vector<14x64xbf16>
    tpu.vector_store %arg7[%c2, %c8], %5 {strides = array<i32>} : memref<32x640xbf16, #tpu.memory_space<vmem>>, vector<14x64xbf16>,
    %c0_6 = arith.constant 0 : index
    %c0_7 = arith.constant 0 : index
    %7 = vector.load %arg1[%c0_6, %c0_7] : memref<32x64xf32, #tpu.memory_space<vmem>>, vector<15x64xf32>
    %8 = arith.truncf %7 : vector<15x64xf32> to vector<15x64xbf16>
    %c1 = arith.constant 1 : index
    %c136 = arith.constant 136 : index
    %9 = vector.load %arg7[%c1, %c136] : memref<32x640xbf16, #tpu.memory_space<vmem>>, vector<15x64xbf16>
    tpu.vector_store %arg7[%c1, %c136], %8 {strides = array<i32>} : memref<32x640xbf16, #tpu.memory_space<vmem>>, vector<15x64xbf16>,
    %c0_8 = arith.constant 0 : index
    %c0_9 = arith.constant 0 : index
    %10 = vector.load %arg1[%c0_8, %c0_9] : memref<32x64xf32, #tpu.memory_space<vmem>>, vector<16x64xf32>
    %11 = arith.truncf %10 : vector<16x64xf32> to vector<16x64xbf16>
    %c0_10 = arith.constant 0 : index
    %c264 = arith.constant 264 : index
    %12 = vector.load %arg7[%c0_10, %c264] : memref<32x640xbf16, #tpu.memory_space<vmem>>, vector<16x64xbf16>
    tpu.vector_store %arg7[%c0_10, %c264], %11 {strides = array<i32>} : memref<32x640xbf16, #tpu.memory_space<vmem>>, vector<16x64xbf16>,
    %c1_11 = arith.constant 1 : index
    %c0_12 = arith.constant 0 : index
    %13 = vector.load %arg1[%c1_11, %c0_12] : memref<32x64xf32, #tpu.memory_space<vmem>>, vector<15x64xf32>
    %14 = arith.truncf %13 : vector<15x64xf32> to vector<15x64xbf16>
    %c0_13 = arith.constant 0 : index
    %c392 = arith.constant 392 : index
    %15 = vector.load %arg7[%c0_13, %c392] : memref<32x640xbf16, #tpu.memory_space<vmem>>, vector<15x64xbf16>
    tpu.vector_store %arg7[%c0_13, %c392], %14 {strides = array<i32>} : memref<32x640xbf16, #tpu.memory_space<vmem>>, vector<15x64xbf16>,
    %c2_14 = arith.constant 2 : index
    %c0_15 = arith.constant 0 : index
    %16 = vector.load %arg1[%c2_14, %c0_15] : memref<32x64xf32, #tpu.memory_space<vmem>>, vector<14x64xf32>
    %17 = arith.truncf %16 : vector<14x64xf32> to vector<14x64xbf16>
    %c0_16 = arith.constant 0 : index
    %c520 = arith.constant 520 : index
    %18 = vector.load %arg7[%c0_16, %c520] : memref<32x640xbf16, #tpu.memory_space<vmem>>, vector<14x64xbf16>
    tpu.vector_store %arg7[%c0_16, %c520], %17 {strides = array<i32>} : memref<32x640xbf16, #tpu.memory_space<vmem>>, vector<14x64xbf16>,
    %c16 = arith.constant 16 : index
    %c0_17 = arith.constant 0 : index
    %19 = vector.load %arg1[%c16, %c0_17] : memref<32x64xf32, #tpu.memory_space<vmem>>, vector<14x64xf32>
    %20 = arith.truncf %19 : vector<14x64xf32> to vector<14x64xbf16>
    %c18 = arith.constant 18 : index
    %c8_18 = arith.constant 8 : index
    %21 = vector.load %arg7[%c18, %c8_18] : memref<32x640xbf16, #tpu.memory_space<vmem>>, vector<14x64xbf16>
    tpu.vector_store %arg7[%c18, %c8_18], %20 {strides = array<i32>} : memref<32x640xbf16, #tpu.memory_space<vmem>>, vector<14x64xbf16>,
    %c16_19 = arith.constant 16 : index
    %c0_20 = arith.constant 0 : index
    %22 = vector.load %arg1[%c16_19, %c0_20] : memref<32x64xf32, #tpu.memory_space<vmem>>, vector<15x64xf32>
    %23 = arith.truncf %22 : vector<15x64xf32> to vector<15x64xbf16>
    %c17 = arith.constant 17 : index
    %c136_21 = arith.constant 136 : index
    %24 = vector.load %arg7[%c17, %c136_21] : memref<32x640xbf16, #tpu.memory_space<vmem>>, vector<15x64xbf16>
    tpu.vector_store %arg7[%c17, %c136_21], %23 {strides = array<i32>} : memref<32x640xbf16, #tpu.memory_space<vmem>>, vector<15x64xbf16>,
    %c16_22 = arith.constant 16 : index
    %c0_23 = arith.constant 0 : index
    %25 = vector.load %arg1[%c16_22, %c0_23] : memref<32x64xf32, #tpu.memory_space<vmem>>, vector<16x64xf32>
    %26 = arith.truncf %25 : vector<16x64xf32> to vector<16x64xbf16>
    %c16_24 = arith.constant 16 : index
    %c264_25 = arith.constant 264 : index
    %27 = vector.load %arg7[%c16_24, %c264_25] : memref<32x640xbf16, #tpu.memory_space<vmem>>, vector<16x64xbf16>
    tpu.vector_store %arg7[%c16_24, %c264_25], %26 {strides = array<i32>} : memref<32x640xbf16, #tpu.memory_space<vmem>>, vector<16x64xbf16>,
    %c17_26 = arith.constant 17 : index
    %c0_27 = arith.constant 0 : index
    %28 = vector.load %arg1[%c17_26, %c0_27] : memref<32x64xf32, #tpu.memory_space<vmem>>, vector<15x64xf32>
    %29 = arith.truncf %28 : vector<15x64xf32> to vector<15x64xbf16>
    %c16_28 = arith.constant 16 : index
    %c392_29 = arith.constant 392 : index
    %30 = vector.load %arg7[%c16_28, %c392_29] : memref<32x640xbf16, #tpu.memory_space<vmem>>, vector<15x64xbf16>
    tpu.vector_store %arg7[%c16_28, %c392_29], %29 {strides = array<i32>} : memref<32x640xbf16, #tpu.memory_space<vmem>>, vector<15x64xbf16>,
    %c18_30 = arith.constant 18 : index
    %c0_31 = arith.constant 0 : index
    %31 = vector.load %arg1[%c18_30, %c0_31] : memref<32x64xf32, #tpu.memory_space<vmem>>, vector<14x64xf32>
    %32 = arith.truncf %31 : vector<14x64xf32> to vector<14x64xbf16>
    %c16_32 = arith.constant 16 : index
    %c520_33 = arith.constant 520 : index
    %33 = vector.load %arg7[%c16_32, %c520_33] : memref<32x640xbf16, #tpu.memory_space<vmem>>, vector<14x64xbf16>
    tpu.vector_store %arg7[%c16_32, %c520_33], %32 {strides = array<i32>} : memref<32x640xbf16, #tpu.memory_space<vmem>>, vector<14x64xbf16>,
    %c0_34 = arith.constant 0 : index
    %c0_35 = arith.constant 0 : index
    %34 = vector.load %arg7[%c0_34, %c0_35] : memref<32x640xbf16, #tpu.memory_space<vmem>>, vector<32x640xbf16>
    %c0_36 = arith.constant 0 : index
    %c0_37 = arith.constant 0 : index
    %35 = vector.load %arg2[%c0_36, %c0_37] : memref<640x128xbf16, #tpu.memory_space<vmem>>, vector<640x128xbf16>
    %cst_38 = arith.constant dense<0.000000e+00> : vector<32x128xf32>
    %36 = tpu.matmul %34, %35, %cst_38 {dimension_numbers = #tpu.dot_dimension_numbers<[1], [0], [0], [1], [0, 0, 1, 1], [], []>} : vector<32x640xbf16>, vector<640x128xbf16>, vector<32x128xf32> -> vector<32x128xf32>
    %c0_39 = arith.constant 0 : index
    %c0_40 = arith.constant 0 : index
    %37 = vector.load %arg3[%c0_39, %c0_40] : memref<1x128xf32, #tpu.memory_space<vmem>>, vector<1x128xf32>
    %38 = vector.broadcast %37 : vector<1x128xf32> to vector<32x128xf32>
    %39 = arith.addf %36, %38 : vector<32x128xf32>
    %cst_41 = arith.constant 0.000000e+00 : f32
    %40 = vector.broadcast %cst_41 : f32 to vector<32x128xf32>
    %41 = arith.maximumf %39, %40 : vector<32x128xf32>
    %42 = arith.truncf %41 : vector<32x128xf32> to vector<32x128xbf16>
    %43 = vector.extract_strided_slice %42 {offsets = [0, 0], sizes = [14, 128], strides = [1, 1]} : vector<32x128xbf16> to vector<14x128xbf16>
    %c2_42 = arith.constant 2 : index
    %c16_43 = arith.constant 16 : index
    %44 = vector.load %arg8[%c2_42, %c16_43] : memref<32x1280xbf16, #tpu.memory_space<vmem>>, vector<14x128xbf16>
    tpu.vector_store %arg8[%c2_42, %c16_43], %43 {strides = array<i32>} : memref<32x1280xbf16, #tpu.memory_space<vmem>>, vector<14x128xbf16>,
    %45 = vector.extract_strided_slice %42 {offsets = [0, 0], sizes = [15, 128], strides = [1, 1]} : vector<32x128xbf16> to vector<15x128xbf16>
    %c1_44 = arith.constant 1 : index
    %c272 = arith.constant 272 : index
    %46 = vector.load %arg8[%c1_44, %c272] : memref<32x1280xbf16, #tpu.memory_space<vmem>>, vector<15x128xbf16>
    tpu.vector_store %arg8[%c1_44, %c272], %45 {strides = array<i32>} : memref<32x1280xbf16, #tpu.memory_space<vmem>>, vector<15x128xbf16>,
    %47 = vector.extract_strided_slice %42 {offsets = [0, 0], sizes = [16, 128], strides = [1, 1]} : vector<32x128xbf16> to vector<16x128xbf16>
    %c0_45 = arith.constant 0 : index
    %c528 = arith.constant 528 : index
    %48 = vector.load %arg8[%c0_45, %c528] : memref<32x1280xbf16, #tpu.memory_space<vmem>>, vector<16x128xbf16>
    tpu.vector_store %arg8[%c0_45, %c528], %47 {strides = array<i32>} : memref<32x1280xbf16, #tpu.memory_space<vmem>>, vector<16x128xbf16>,
    %49 = vector.extract_strided_slice %42 {offsets = [1, 0], sizes = [15, 128], strides = [1, 1]} : vector<32x128xbf16> to vector<15x128xbf16>
    %c0_46 = arith.constant 0 : index
    %c784 = arith.constant 784 : index
    %50 = vector.load %arg8[%c0_46, %c784] : memref<32x1280xbf16, #tpu.memory_space<vmem>>, vector<15x128xbf16>
    tpu.vector_store %arg8[%c0_46, %c784], %49 {strides = array<i32>} : memref<32x1280xbf16, #tpu.memory_space<vmem>>, vector<15x128xbf16>,
    %51 = vector.extract_strided_slice %42 {offsets = [2, 0], sizes = [14, 128], strides = [1, 1]} : vector<32x128xbf16> to vector<14x128xbf16>
    %c0_47 = arith.constant 0 : index
    %c1040 = arith.constant 1040 : index
    %52 = vector.load %arg8[%c0_47, %c1040] : memref<32x1280xbf16, #tpu.memory_space<vmem>>, vector<14x128xbf16>
    tpu.vector_store %arg8[%c0_47, %c1040], %51 {strides = array<i32>} : memref<32x1280xbf16, #tpu.memory_space<vmem>>, vector<14x128xbf16>,
    %53 = vector.extract_strided_slice %42 {offsets = [16, 0], sizes = [14, 128], strides = [1, 1]} : vector<32x128xbf16> to vector<14x128xbf16>
    %c18_48 = arith.constant 18 : index
    %c16_49 = arith.constant 16 : index
    %54 = vector.load %arg8[%c18_48, %c16_49] : memref<32x1280xbf16, #tpu.memory_space<vmem>>, vector<14x128xbf16>
    tpu.vector_store %arg8[%c18_48, %c16_49], %53 {strides = array<i32>} : memref<32x1280xbf16, #tpu.memory_space<vmem>>, vector<14x128xbf16>,
    %55 = vector.extract_strided_slice %42 {offsets = [16, 0], sizes = [15, 128], strides = [1, 1]} : vector<32x128xbf16> to vector<15x128xbf16>
    %c17_50 = arith.constant 17 : index
    %c272_51 = arith.constant 272 : index
    %56 = vector.load %arg8[%c17_50, %c272_51] : memref<32x1280xbf16, #tpu.memory_space<vmem>>, vector<15x128xbf16>
    tpu.vector_store %arg8[%c17_50, %c272_51], %55 {strides = array<i32>} : memref<32x1280xbf16, #tpu.memory_space<vmem>>, vector<15x128xbf16>,
    %57 = vector.extract_strided_slice %42 {offsets = [16, 0], sizes = [16, 128], strides = [1, 1]} : vector<32x128xbf16> to vector<16x128xbf16>
    %c16_52 = arith.constant 16 : index
    %c528_53 = arith.constant 528 : index
    %58 = vector.load %arg8[%c16_52, %c528_53] : memref<32x1280xbf16, #tpu.memory_space<vmem>>, vector<16x128xbf16>
    tpu.vector_store %arg8[%c16_52, %c528_53], %57 {strides = array<i32>} : memref<32x1280xbf16, #tpu.memory_space<vmem>>, vector<16x128xbf16>,
    %59 = vector.extract_strided_slice %42 {offsets = [17, 0], sizes = [15, 128], strides = [1, 1]} : vector<32x128xbf16> to vector<15x128xbf16>
    %c16_54 = arith.constant 16 : index
    %c784_55 = arith.constant 784 : index
    %60 = vector.load %arg8[%c16_54, %c784_55] : memref<32x1280xbf16, #tpu.memory_space<vmem>>, vector<15x128xbf16>
    tpu.vector_store %arg8[%c16_54, %c784_55], %59 {strides = array<i32>} : memref<32x1280xbf16, #tpu.memory_space<vmem>>, vector<15x128xbf16>,
    %61 = vector.extract_strided_slice %42 {offsets = [18, 0], sizes = [14, 128], strides = [1, 1]} : vector<32x128xbf16> to vector<14x128xbf16>
    %c16_56 = arith.constant 16 : index
    %c1040_57 = arith.constant 1040 : index
    %62 = vector.load %arg8[%c16_56, %c1040_57] : memref<32x1280xbf16, #tpu.memory_space<vmem>>, vector<14x128xbf16>
    tpu.vector_store %arg8[%c16_56, %c1040_57], %61 {strides = array<i32>} : memref<32x1280xbf16, #tpu.memory_space<vmem>>, vector<14x128xbf16>,
    %c0_58 = arith.constant 0 : index
    %c0_59 = arith.constant 0 : index
    %63 = vector.load %arg8[%c0_58, %c0_59] : memref<32x1280xbf16, #tpu.memory_space<vmem>>, vector<32x1280xbf16>
    %c0_60 = arith.constant 0 : index
    %c0_61 = arith.constant 0 : index
    %64 = vector.load %arg4[%c0_60, %c0_61] : memref<1280x128xbf16, #tpu.memory_space<vmem>>, vector<1280x128xbf16>
    %cst_62 = arith.constant dense<0.000000e+00> : vector<32x128xf32>
    %65 = tpu.matmul %63, %64, %cst_62 {dimension_numbers = #tpu.dot_dimension_numbers<[1], [0], [0], [1], [0, 0, 1, 1], [], []>} : vector<32x1280xbf16>, vector<1280x128xbf16>, vector<32x128xf32> -> vector<32x128xf32>
    %c0_63 = arith.constant 0 : index
    %c0_64 = arith.constant 0 : index
    %66 = vector.load %arg5[%c0_63, %c0_64] : memref<1x128xf32, #tpu.memory_space<vmem>>, vector<1x128xf32>
    %67 = vector.broadcast %66 : vector<1x128xf32> to vector<32x128xf32>
    %68 = arith.addf %65, %67 : vector<32x128xf32>
    %cst_65 = arith.constant 0.000000e+00 : f32
    %69 = vector.broadcast %cst_65 : f32 to vector<32x128xf32>
    %70 = arith.maximumf %68, %69 : vector<32x128xf32>
    %c0_66 = arith.constant 0 : index
    %c0_67 = arith.constant 0 : index
    %71 = vector.load %arg6[%c0_66, %c0_67] : memref<32x128xf32, #tpu.memory_space<vmem>>, vector<32x128xf32>
    tpu.vector_store %arg6[%c0_66, %c0_67], %70 {strides = array<i32>} : memref<32x128xf32, #tpu.memory_space<vmem>>, vector<32x128xf32>,
    return
  }
  func.func @transform_0(%arg0: i32) -> (i32, i32) {
    %c0_i32 = arith.constant 0 : i32
    %c0_i32_0 = arith.constant 0 : i32
    return %arg0, %c0_i32 : i32, i32
  }
  func.func @transform_1(%arg0: i32) -> (i32, i32) {
    %c0_i32 = arith.constant 0 : i32
    %c0_i32_0 = arith.constant 0 : i32
    %c0_i32_1 = arith.constant 0 : i32
    return %c0_i32, %c0_i32_0 : i32, i32
  }
  func.func @transform_2(%arg0: i32) -> (i32, i32) {
    %c0_i32 = arith.constant 0 : i32
    %c0_i32_0 = arith.constant 0 : i32
    %c0_i32_1 = arith.constant 0 : i32
    return %c0_i32, %c0_i32_0 : i32, i32
  }
  func.func @transform_3(%arg0: i32) -> (i32, i32) {
    %c0_i32 = arith.constant 0 : i32
    %c0_i32_0 = arith.constant 0 : i32
    %c0_i32_1 = arith.constant 0 : i32
    return %c0_i32, %c0_i32_0 : i32, i32
  }
  func.func @transform_4(%arg0: i32) -> (i32, i32) {
    %c0_i32 = arith.constant 0 : i32
    %c0_i32_0 = arith.constant 0 : i32
    %c0_i32_1 = arith.constant 0 : i32
    return %c0_i32, %c0_i32_0 : i32, i32
  }
  func.func @transform_5(%arg0: i32) -> (i32, i32) {
    %c0_i32 = arith.constant 0 : i32
    %c0_i32_0 = arith.constant 0 : i32
    return %arg0, %c0_i32 : i32, i32
  }
}

</mosaic_0001>

<bundles_post_ra>
// kernel: tpu_custom_call.1
= control target key start
LH: loop header
LB: loop body
LE: loop exit
PB: predicated region body
PF: predicated region fallthrough
CT: control target
= control target key end

     0   :  { %10 = vsyncpa [#allocation5], 0  ;;  %s2515_s0 = inlined_call_operand.hbm [shape: f32[32,64], index: 0, kind: input, shape index: {}]   ;;  %s2516_s1 = inlined_call_operand.hbm [shape: bf16[640,128], index: 1, kind: input, shape index: {}]   ;;  %s2517_s2 = inlined_call_operand.vmem [shape: f32[1,128], index: 2, kind: input, shape index: {}]   ;;  %s2518_s3 = inlined_call_operand.hbm [shape: bf16[1280,128], index: 3, kind: input, shape index: {}]   ;;  %s2519_s4 = inlined_call_operand.vmem [shape: f32[1,128], index: 4, kind: input, shape index: {}]   ;;  %s2520_s5 = inlined_call_operand.hbm [shape: f32[32,128], index: 5, kind: output, shape index: {}]  }
   0x1   :  { %11 = vsyncpa [#allocation8], 0 }
   0x2   :  { %12 = vsyncpa [#allocation6], 0  ;;  %s2306_s18 = smov [#allocation7]   ;;  %s2212_s22 = scalar_lea.hbm %s2516_s1, 5120 }
   0x3   :  { %s30_s19 = sshll.u32 %s2306_s18, 4  ;;  %p2213_p0 = scmp.ne.s32.totalorder %s2516_s1, %s2212_s22  ;;  %s31_s19 = int_to_ptr.vmem [resolvable:$true] %s30_s19 }
   0x4   :  { %p2216_p1 = scmp.lt.u32.totalorder %s2212_s22, %s2516_s1 }
   0x6   :  { %p2218_p2 = pnand %p2216_p1, %p2213_p0 }
   0x8   :  { %2221 = shalt.err (!%p2218_p2)
}
   0x9   :  { %s2222_s27 = scalar_lea.vmem %s31_s19, 5120  ;;  %p2227_p4 = scmp.lt.s32.totalorder %s31_s19, %s31_s19 }
   0xa   :  { %p2223_p3 = scmp.ne.s32.totalorder %s31_s19, %s2222_s27  ;;  %p2228_p5 = scmp.lt.s32.totalorder %s2222_s27, %s2222_s27 }
   0xc   :  { %p2229_p6 = por %p2228_p5, %p2227_p4 }
   0xe   :  { %p2230_p7 = pnand %p2229_p6, %p2223_p3 }
  0x10   :  { %2233 = shalt.err (!%p2230_p7)
}
  0x11   :  { %s2307_s28 = smov 64   ;;  %s2308_s29 = smov 4  }
  0x12   :  { %36 = dma.hbm_to_vmem [thread:$0]  %s2516_s1, 5120, %s31_s19, [#allocation8], %s2307_s28, %s2307_s28, %s2308_s29  }
  0x13   :  { %s2309_s7 = smov [#allocation4]   ;;  %s2234_s11 = scalar_lea.hbm %s2515_s0, 512 }
  0x14   :  { %s18_s8 = sshll.u32 %s2309_s7, 4  ;;  %p2235_p8 = scmp.ne.s32.totalorder %s2515_s0, %s2234_s11  ;;  %s19_s8 = int_to_ptr.vmem [resolvable:$true] %s18_s8 }
  0x15   :  { %p2238_p9 = scmp.lt.u32.totalorder %s2234_s11, %s2515_s0 }
  0x17   :  { %p2240_p10 = pnand %p2238_p9, %p2235_p8 }
  0x19   :  { %2243 = shalt.err (!%p2240_p10)
}
  0x1a   :  { %s2244_s16 = scalar_lea.vmem %s19_s8, 512  ;;  %p2249_p12 = scmp.lt.s32.totalorder %s19_s8, %s19_s8 }
  0x1b   :  { %p2245_p11 = scmp.ne.s32.totalorder %s19_s8, %s2244_s16  ;;  %p2250_p13 = scmp.lt.s32.totalorder %s2244_s16, %s2244_s16 }
  0x1d   :  { %p2251_p0 = por %p2250_p13, %p2249_p12 }
  0x1f   :  { %p2252_p1 = pnand %p2251_p0, %p2245_p11 }
  0x21   :  { %2255 = shalt.err (!%p2252_p1)
}
  0x22   :  { %s2310_s1 = smov 128   ;;  %s2311_s17 = smov 8  }
  0x23   :  { %24 = dma.hbm_to_vmem [thread:$0]  %s2515_s0, 512, %s19_s8, [#allocation5], %s2310_s1, %s2310_s1, %s2311_s17  }
  0x24   :  { %s2312_s20 = smov [#allocation9]   ;;  %s2256_s24 = scalar_lea.hbm %s2518_s3, 10240 }
  0x25   :  { %s44_s21 = sshll.u32 %s2312_s20, 4  ;;  %p2257_p2 = scmp.ne.s32.totalorder %s2518_s3, %s2256_s24  ;;  %s45_s21 = int_to_ptr.vmem [resolvable:$true] %s44_s21 }
  0x26   :  { %p2260_p3 = scmp.lt.u32.totalorder %s2256_s24, %s2518_s3 }
  0x28   :  { %p2262_p4 = pnand %p2260_p3, %p2257_p2 }
  0x2a   :  { %2265 = shalt.err (!%p2262_p4)
}
  0x2b   :  { %s2266_s6 = scalar_lea.vmem %s45_s21, 10240  ;;  %p2271_p6 = scmp.lt.s32.totalorder %s45_s21, %s45_s21 }
  0x2c   :  { %p2267_p5 = scmp.ne.s32.totalorder %s45_s21, %s2266_s6  ;;  %p2272_p7 = scmp.lt.s32.totalorder %s2266_s6, %s2266_s6 }
  0x2e   :  { %p2273_p8 = por %p2272_p7, %p2271_p6 }
  0x30   :  { %p2274_p9 = pnand %p2273_p8, %p2267_p5 }
  0x32   :  { %2277 = shalt.err (!%p2274_p9)
}
  0x33   :  { %50 = dma.hbm_to_vmem [thread:$0]  %s2518_s3, 10240, %s45_s21, [#allocation8], %s2307_s28, %s2307_s28, %s2308_s29  }
  0x34   :  { %2300 = dma.done.wait [#allocation5], 512  }
  0x35   :  { %2301 = vsyncadd [#allocation5], 4294966784 }
  0x36   :  { %2302 = dma.done.wait [#allocation8], 15360  }
  0x37   :  { %2303 = vsyncadd [#allocation8], 4294951936  ;;  %v2313_v0 = vmov 0   ;;  %v103_v1 = vld [vmem:[#allocation4] sm:$0xff]  ;;  %v104_v2 = vld [vmem:[#allocation4 + $0x8] sm:$0x7f] }
  0x38   :  { %63 = vst [vmem:[#allocation2] sm:$0xff] %v2313_v0  ;;  %65 = vst [vmem:[#allocation2 + $0x10] sm:$0xff] %v2313_v0  ;;  %v2391_v3 = vld [vmem:[#allocation4 + $0x10] sm:$0xff]  ;;  %v105_v4 = vpack.c.bf16 %v104_v2, %v103_v1  ;;  %v162_v5 = vld [vmem:[#allocation4 + $0x18] sm:$0x7f]  ;;  %vm116_vm0 = vcmask 588864  }
  0x39   :  { %67 = vst [vmem:[#allocation2 + $0x20] sm:$0xff] %v2313_v0  ;;  %68 = vst [vmem:[#allocation2 + $0x28] sm:$0xff] %v2313_v0  ;;  %v163_v6 = vpack.c.bf16 %v162_v5, %v2391_v3  ;;  %v94_v7 = vld [vmem:[#allocation4 + $0x8] sm:$0x3f]  ;;  %v153_v10 = vld [vmem:[#allocation4 + $0x18] sm:$0x3f] }
  0x3a   :  { %70 = vst [vmem:[#allocation2 + $0x38] sm:$0xff] %v2313_v0  ;;  %72 = vst [vmem:[#allocation2 + $0x48] sm:$0xff] %v2313_v0  ;;  %v107_v8 = vshrl.u32 %v105_v4, 16  ;;  %v110_v9 = vshll.u32 %v105_v4, 16  ;;  %v95_v14 = vpack.c.bf16 %v94_v7, %v103_v1  ;;  %v154_v16 = vpack.c.bf16 %v153_v10, %v2391_v3  ;;  %v2091_v17 = vld [vmem:[#allocation7 + $0x40] sm:$0xff]   ;;  %v2093_v23 = vld [vmem:[#allocation7 + $0x48] sm:$0xff]  }
  0x3b   :  { %73 = vst [vmem:[#allocation3] sm:$0xff] %v2313_v0  ;;  %74 = vst [vmem:[#allocation3 + $0x8] sm:$0xff] %v2313_v0  ;;  %v165_v11 = vshrl.u32 %v163_v6, 16  ;;  %v168_v12 = vshll.u32 %v163_v6, 16  ;;  %v2092_v19 = vld [vmem:[#allocation7] sm:$0xff]   ;;  %1855 = vmatprep.subr.bf16.mxu0 %v2091_v17  ;;  %v123_v25 = vld [vmem:[#allocation4 + $0x8] sm:$0xff] }
  0x3c   :  { %77 = vst [vmem:[#allocation3 + $0x20] sm:$0xff] %v2313_v0  ;;  %78 = vst [vmem:[#allocation3 + $0x28] sm:$0xff] %v2313_v0  ;;  %v109_v13 = vrot.slane %v107_v8, 7  ;;  %v131_v21 = vld [vmem:[#allocation4 + $0x1] sm:$0xff]  ;;  %v132_v22 = vld [vmem:[#allocation4 + $0x9] sm:$0x7f]  ;;  %1856 = vmatpush3.bf16.msra.mxu0 %v2092_v19  ;;  %v124_v37 = vpack.c.bf16 %v123_v25, %v103_v1 }
  0x3d   :  { %81 = vst [vmem:[#allocation3 + $0x40] sm:$0xff] %v2313_v0  ;;  %82 = vst [vmem:[#allocation3 + $0x48] sm:$0xff] %v2313_v0  ;;  %v167_v15 = vrot.slane %v165_v11, 7  ;;  %v97_v24 = vrot.slane %v95_v14, 7  ;;  %v2094_v26 = vld [vmem:[#allocation7 + $0x8] sm:$0xff]   ;;  %v156_v27 = vrot.slane %v154_v16, 7  ;;  %1857 = vmatprep.subr.bf16.mxu0 %v2093_v23  ;;  %v133_v33 = vpack.c.bf16 %v132_v22, %v131_v21 }
  0x3e   :  { %83 = vst [vmem:[#allocation3 + $0x50] sm:$0xff] %v2313_v0  ;;  %84 = vst [vmem:[#allocation3 + $0x58] sm:$0xff] %v2313_v0  ;;  %v112_v18 = vor.u32 %v110_v9, %v109_v13  ;;  %v2095_v28 = vld [vmem:[#allocation7 + $0xc0] sm:$0xff]   ;;  %v2096_v29 = vld [vmem:[#allocation7 + $0x50] sm:$0xff]   ;;  %vm117_vm1 = vsmask.f32 7938 }
  0x3f   :  { %87 = vst [vmem:[#allocation3 + $0x70] sm:$0xff] %v2313_v0  ;;  %88 = vst [vmem:[#allocation3 + $0x78] sm:$0xff] %v2313_v0  ;;  %v170_v20 = vor.u32 %v168_v12, %v167_v15  ;;  %v143_v30 = vld [vmem:[#allocation4 + $0x2] sm:$0xff]  ;;  %v144_v31 = vld [vmem:[#allocation4 + $0xa] sm:$0x3f]  ;;  %1883 = vmatprep.subr.bf16.mxu1 %v2095_v28  ;;  %vm101_vm3 = vcmask 588865  }
  0x40   :  { %91 = vst [vmem:[#allocation3 + $0x90] sm:$0xff] %v2313_v0  ;;  %92 = vst [vmem:[#allocation3 + $0x98] sm:$0xff] %v2313_v0  ;;  %113 = vrot.lane.b32.xlu0 %v112_v18, %s2311_s17  ;;  %v2097_v32 = vld [vmem:[#allocation7 + $0x80] sm:$0xff]   ;;  %v195_v34 = vld [vmem:[#allocation4 + $0x12] sm:$0xff]  ;;  %1858 = vmatpush3.bf16.msra.mxu0 %v2094_v26  ;;  %v145_v43 = vpack.c.bf16 %v144_v31, %v143_v30  ;;  %vm138_vm4 = vsmask.f32 7424 }
  0x41   :  { %171 = vrot.lane.b32.xlu1 %v170_v20, %s2311_s17  ;;  %v196_v35 = vld [vmem:[#allocation4 + $0x1a] sm:$0x3f]  ;;  %v2098_v36 = vld [vmem:[#allocation7 + $0x10] sm:$0xff]   ;;  %1859 = vmatprep.subr.bf16.mxu0 %v2096_v29  ;;  %v2099_v38 = vld [vmem:[#allocation7 + $0xc8] sm:$0xff]   ;;  %vm150_vm6 = vcmask 587840   ;;  %vm698_vm7 = vcmask 1047681  }
  0x42   :  { %1884 = vmatpush3.bf16.msra.mxu1 %v2097_v32  ;;  %v2100_v39 = vld [vmem:[#allocation7 + $0x58] sm:$0xff]   ;;  %v2101_v42 = vld [vmem:[#allocation7 + $0x88] sm:$0xff]   ;;  %v197_v46 = vpack.c.bf16 %v196_v35, %v195_v34  ;;  %v2103_v47 = vld [vmem:[#allocation7 + $0xd0] sm:$0xff]   ;;  %vm700_vm8 = vcmask 130049   ;;  %vm712_vm9 = vcmask 1047680   ;;  %vm717_vm10 = vcmask 130048  }
  0x43   :  { %v185_v40 = vld [vmem:[#allocation4 + $0x11] sm:$0xff]  ;;  %v186_v41 = vld [vmem:[#allocation4 + $0x19] sm:$0x7f]  ;;  %1885 = vmatprep.subr.bf16.mxu1 %v2099_v38  ;;  %v2104_v48 = vld [vmem:[#allocation7 + $0x60] sm:$0xff]   ;;  %vm746_vm13 = vcmask 1046656   ;;  %vm748_vm14 = vcmask 129024  }
  0x44   :  { %98 = vrot.lane.b32.xlu0 %v97_v24, %s2311_s17  ;;  %v178_v44 = vld [vmem:[#allocation4 + $0x18] sm:$0xff]  ;;  %1860 = vmatpush3.bf16.msra.mxu0 %v2098_v36  ;;  %v2105_v49 = vld [vmem:[#allocation7 + $0x90] sm:$0xff]   ;;  %v187_v50 = vpack.c.bf16 %v186_v41, %v185_v40  ;;  %v2106_v51 = vld [vmem:[#allocation7 + $0x20] sm:$0xff]  }
  0x45   :  { %157 = vrot.lane.b32.xlu1 %v156_v27, %s2311_s17  ;;  %v2102_v45 = vld [vmem:[#allocation7 + $0x18] sm:$0xff]   ;;  %1861 = vmatprep.subr.bf16.mxu0 %v2100_v39  ;;  %v179_v52 = vpack.c.bf16 %v178_v44, %v2391_v3  ;;  %v2108_v54 = vld [vmem:[#allocation7 + $0x68] sm:$0xff]   ;;  %v2111_v57 = vld [vmem:[#allocation7 + $0xe0] sm:$0xff]  }
  0x46   :  { %1886 = vmatpush3.bf16.msra.mxu1 %v2101_v42  ;;  %v2107_v53 = vld [vmem:[#allocation7 + $0xd8] sm:$0xff]   ;;  %v2110_v56 = vld [vmem:[#allocation7 + $0x28] sm:$0xff]   ;;  %v2112_v58 = vld [vmem:[#allocation7 + $0x70] sm:$0xff]  }
  0x47   :  { %1887 = vmatprep.subr.bf16.mxu1 %v2103_v47  ;;  %v2109_v55 = vld [vmem:[#allocation7 + $0x98] sm:$0xff]   ;;  %v2113_v59 = vld [vmem:[#allocation7 + $0xa0] sm:$0xff]   ;;  %v2114_v60 = vld [vmem:[#allocation7 + $0x30] sm:$0xff]  }
  0x48   :  { %135 = vrot.lane.b32.xlu0 %v133_v33, %s2311_s17  ;;  %1862 = vmatpush3.bf16.msra.mxu0 %v2102_v45  ;;  %v2115_v61 = vld [vmem:[#allocation7 + $0xe8] sm:$0xff]   ;;  %v2116_v62 = vld [vmem:[#allocation7 + $0x78] sm:$0xff]   ;;  %v2119_v1 = vld [vmem:[#allocation7 + $0xf0] sm:$0xff]  }
  0x49   :  { %126 = vrot.lane.b32.xlu1 %v124_v37, %s2311_s17  ;;  %1863 = vmatprep.subr.bf16.mxu0 %v2104_v48  ;;  %v2117_v63 = vld [vmem:[#allocation7 + $0xa8] sm:$0xff]   ;;  %v2118_v0 = vld [vmem:[#allocation7 + $0x38] sm:$0xff]   ;;  %v2120_v2 = vld [vmem:[#allocation7 + $0xb0] sm:$0xff]  }
  0x4a   :  { %1888 = vmatpush3.bf16.msra.mxu1 %v2105_v49  ;;  %v2121_v3 = vld [vmem:[#allocation7 + $0x100] sm:$0xff]   ;;  %v2122_v4 = vld [vmem:[#allocation7 + $0xf8] sm:$0xff]   ;;  %vm2408_vm2 = vmand %vm116_vm0, %vm117_vm1 }
  0x4b   :  { %1889 = vmatprep.subr.bf16.mxu1 %v2107_v53  ;;  %v2123_v5 = vld [vmem:[#allocation7 + $0xb8] sm:$0xff]   ;;  %vm2418_vm5 = vmand %vm116_vm0, %vm138_vm4  ;;  %v2124_v17 = vld [vmem:[#allocation7 + $0x108] sm:$0xff]  }
  0x4c   :  { %147 = vrot.lane.b32.xlu0 %v145_v43, %s2311_s17  ;;  %1864 = vmatpush3.bf16.msra.mxu0 %v2106_v51  ;;  %v2125_v21 = vld [vmem:[#allocation7 + $0x110] sm:$0xff]   ;;  %v2126_v27 = vld [vmem:[#allocation7 + $0x118] sm:$0xff]   ;;  %v2127_v29 = vld [vmem:[#allocation7 + $0x120] sm:$0xff]  }
  0x4d   :  { %199 = vrot.lane.b32.xlu1 %v197_v46, %s2311_s17  ;;  %1865 = vmatprep.subr.bf16.mxu0 %v2108_v54  ;;  %v2128_v31 = vld [vmem:[#allocation7 + $0x128] sm:$0xff]   ;;  %v2129_v32 = vld [vmem:[#allocation7 + $0x130] sm:$0xff]   ;;  %v2130_v33 = vld [vmem:[#allocation7 + $0x138] sm:$0xff]  }
  0x4e   :  { %1890 = vmatpush3.bf16.msra.mxu1 %v2109_v55  ;;  %v2131_v35 = vld [vmem:[#allocation9 + $0x40] sm:$0xff]   ;;  %v2133_v37 = vld [vmem:[#allocation9 + $0x48] sm:$0xff]   ;;  %v2137_v42 = vld [vmem:[#allocation9 + $0x50] sm:$0xff]  }
  0x4f   :  { %1891 = vmatprep.subr.bf16.mxu1 %v2111_v57  ;;  %v2132_v36 = vld [vmem:[#allocation9] sm:$0xff]   ;;  %v2139_v40 = vld [vmem:[#allocation9 + $0xc8] sm:$0xff]   ;;  %v2143_v44 = vld [vmem:[#allocation9 + $0xd0] sm:$0xff]  }
  0x50   :  { %189 = vrot.lane.b32.xlu0 %v187_v50, %s2311_s17  ;;  %1866 = vmatpush3.bf16.msra.mxu0 %v2110_v56  ;;  %v2135_v38 = vld [vmem:[#allocation9 + $0xc0] sm:$0xff]   ;;  %v2134_v41 = vld [vmem:[#allocation9 + $0x8] sm:$0xff]   ;;  %v2138_v45 = vld [vmem:[#allocation9 + $0x10] sm:$0xff]  }
  0x51   :  { %181 = vrot.lane.b32.xlu1 %v179_v52, %s2311_s17  ;;  %1867 = vmatprep.subr.bf16.mxu0 %v2112_v58  ;;  %v2136_v39 = vld [vmem:[#allocation9 + $0x80] sm:$0xff]   ;;  %v2140_v43 = vld [vmem:[#allocation9 + $0x88] sm:$0xff]   ;;  %v2141_v46 = vld [vmem:[#allocation9 + $0x58] sm:$0xff]  }
  0x52   :  { %1892 = vmatpush3.bf16.msra.mxu1 %v2113_v59  ;;  %v2144_v47 = vld [vmem:[#allocation9 + $0x90] sm:$0xff]   ;;  %v2147_v48 = vld [vmem:[#allocation9 + $0xd8] sm:$0xff]   ;;  %v2145_v50 = vld [vmem:[#allocation9 + $0x60] sm:$0xff]  }
  0x53   :  { %1893 = vmatprep.subr.bf16.mxu1 %v2115_v61  ;;  %v2142_v49 = vld [vmem:[#allocation9 + $0x18] sm:$0xff]   ;;  %v2151_v52 = vld [vmem:[#allocation9 + $0xe0] sm:$0xff]   ;;  %v2149_v54 = vld [vmem:[#allocation9 + $0x68] sm:$0xff]  }
  0x54   :  { %1868 = vmatpush3.bf16.msra.mxu0 %v2114_v60  ;;  %v2148_v51 = vld [vmem:[#allocation9 + $0x98] sm:$0xff]   ;;  %v2146_v53 = vld [vmem:[#allocation9 + $0x20] sm:$0xff]   ;;  %v2150_v56 = vld [vmem:[#allocation9 + $0x28] sm:$0xff]  }
  0x55   :  { %1869 = vmatprep.subr.bf16.mxu0 %v2116_v62  ;;  %v2152_v55 = vld [vmem:[#allocation9 + $0xa0] sm:$0xff]   ;;  %v1733_v62 = vld [vmem:[%s2517_s2] ss:$0 sm:$0xff]  ;;  %s2314_s2 = smov 16   ;;  %vm2433_vm11 = vmand %vm712_vm9, %vm117_vm1 }
  0x56   :  { %1894 = vmatpush3.bf16.msra.mxu1 %v2117_v63  ;;  %vm2439_vm12 = vmand %vm717_vm10, %vm117_vm1 }
  0x57   :  { %1895 = vmatprep.subr.bf16.mxu1 %v2119_v1  ;;  %vm2463_vm15 = vmand %vm712_vm9, %vm138_vm4 }
  0x58   :  { %1870 = vmatpush3.bf16.msra.mxu0 %v2118_v0 }
  0x59   :  { %2061 = vmatprep.subr.bf16.mxu0 %v2121_v3 }
  0x5a   :  { %1896 = vmatpush3.bf16.msra.mxu1 %v2120_v2 }
  0x5b   :  { %1897 = vmatprep.subr.bf16.mxu1 %v2122_v4 }
  0x5e   :  { %1898 = vmatpush3.bf16.msra.mxu1 %v2123_v5 }
  0x5f   :  { %1921 = vmatprep.subr.bf16.mxu1 %v2131_v35 }
  0xb2   :  { %v114_v7 = vpop.permute.xlu0 %113 }
  0xb3   :  { %v120_v8 = vsel %vm2408_vm2, %v114_v7, 0  ;;  %v172_v9 = vpop.permute.xlu1 %171 }
  0xb4   :  { %v175_v10 = vsel %vm2408_vm2, %v172_v9, 0  ;;  %572 = vmatprep.mubr.bf16.mxu0 %v120_v8 }
  0xb6   :  { %v99_v11 = vpop.permute.xlu0 %98 }
  0xb7   :  { %102 = vst.msk [vmem:[#allocation2] sm:$0xfe] %vm101_vm3, %v99_v11  ;;  %v158_v12 = vpop.permute.xlu1 %157 }
  0xb8   :  { %160 = vst.msk [vmem:[#allocation2 + $0x28] sm:$0xfe] %vm101_vm3, %v158_v12 }
  0xba   :  { %v136_v14 = vpop.permute.xlu0 %135 }
  0xbb   :  { %v141_v15 = vsel %vm2418_vm5, %v136_v14, 0  ;;  %v127_v16 = vpop.permute.xlu1 %126 }
  0xbc   :  { %130 = vst.msk [vmem:[#allocation2 + $0x10] sm:$0xff] %vm116_vm0, %v127_v16  ;;  %621 = vmatprep.mubr.bf16.mxu1 %v141_v15 }
  0xbe   :  { %v203_v18 = vld [vmem:[#allocation2] sm:$0xff]  ;;  %v148_v19 = vpop.permute.xlu0 %147 }
  0xbf   :  { %573 = vmatmul.mubr.bf16.vlgmr.msra.gmra.mrb[0].mxu0 %v203_v18  ;;  %151 = vst.msk [vmem:[#allocation2 + $0x20] sm:$0x7f] %vm150_vm6, %v148_v19  ;;  %v200_v20 = vpop.permute.xlu1 %199  ;;  %v208_v26 = vld [vmem:[#allocation2 + $0x28] sm:$0xff] }
  0xc0   :  { %2062 = vmatpush3.bf16.msra.mxu0 %v2121_v3  ;;  %202 = vst.msk [vmem:[#allocation2 + $0x48] sm:$0x7f] %vm150_vm6, %v200_v20  ;;  %580 = vmatprep.mubr.bf16.mxu0 %v175_v10 }
  0xc1   :  { %2063 = vmatprep.subr.bf16.mxu0 %v2124_v17 }
  0xc2   :  { %v190_v22 = vpop.permute.xlu0 %189 }
  0xc3   :  { %v205_v23 = vld [vmem:[#allocation2 + $0x10] sm:$0xff]  ;;  %v193_v24 = vsel %vm2418_vm5, %v190_v22, 0  ;;  %v182_v25 = vpop.permute.xlu1 %181 }
  0xc4   :  { %2064 = vmatpush3.bf16.msra.mxu0 %v2124_v17  ;;  %622 = vmatmul.mubr.bf16.vlgmr.msra.gmra.mrb[0].mxu1 %v205_v23  ;;  %184 = vst.msk [vmem:[#allocation2 + $0x38] sm:$0xff] %vm116_vm0, %v182_v25  ;;  %vm2469_vm0 = vmand %vm717_vm10, %vm138_vm4 }
  0xc5   :  { %2065 = vmatprep.subr.bf16.mxu0 %v2125_v21  ;;  %629 = vmatprep.mubr.bf16.mxu1 %v193_v24 }
  0xc6   :  { %v207_v28 = vld [vmem:[#allocation2 + $0x20] sm:$0xff]  ;;  %1922 = vmatpush3.bf16.msra.mxu1 %v2132_v36 }
  0xc7   :  { %581 = vmatmul.mubr.bf16.gmra.mrb[4].mxu0 %v208_v26  ;;  %v212_v34 = vld [vmem:[#allocation2 + $0x48] sm:$0xff]  ;;  %1923 = vmatprep.subr.bf16.mxu1 %v2133_v37  ;;  %v2155_v26 = vld [vmem:[#allocation9 + $0xe8] sm:$0xff]  }
  0xc8   :  { %2066 = vmatpush3.bf16.msra.mxu0 %v2125_v21  ;;  %2077 = vmatprep.mubr.bf16.mxu0 %v207_v28  ;;  %v2159_v28 = vld [vmem:[#allocation9 + $0xf0] sm:$0xff]   ;;  %v2157_v37 = vld [vmem:[#allocation9 + $0x78] sm:$0xff]  }
  0xc9   :  { %2067 = vmatprep.subr.bf16.mxu0 %v2126_v27 }
  0xca   :  { %1924 = vmatpush3.bf16.msra.mxu1 %v2134_v41 }
  0xcb   :  { %v210_v30 = vld [vmem:[#allocation2 + $0x38] sm:$0xff]  ;;  %1925 = vmatprep.subr.bf16.mxu1 %v2137_v42 }
  0xcc   :  { %2068 = vmatpush3.bf16.msra.mxu0 %v2126_v27  ;;  %630 = vmatmul.mubr.bf16.gmra.mrb[4].mxu1 %v210_v30  ;;  %v2156_v27 = vld [vmem:[#allocation9 + $0xa8] sm:$0xff]   ;;  %v2153_v30 = vld [vmem:[#allocation9 + $0x70] sm:$0xff]  }
  0xcd   :  { %2069 = vmatprep.subr.bf16.mxu0 %v2127_v29 }
  0xce   :  { %1926 = vmatpush3.bf16.msra.mxu1 %v2138_v45 }
  0xcf   :  { %1927 = vmatprep.subr.bf16.mxu1 %v2141_v46 }
  0xd0   :  { %2070 = vmatpush3.bf16.msra.mxu0 %v2127_v29  ;;  %v2160_v29 = vld [vmem:[#allocation9 + $0xb0] sm:$0xff]  }
  0xd1   :  { %2071 = vmatprep.subr.bf16.mxu0 %v2128_v31 }
  0xd2   :  { %1928 = vmatpush3.bf16.msra.mxu1 %v2142_v49 }
  0xd3   :  { %1929 = vmatprep.subr.bf16.mxu1 %v2145_v50 }
  0xd4   :  { %2072 = vmatpush3.bf16.msra.mxu0 %v2128_v31  ;;  %v2154_v31 = vld [vmem:[#allocation9 + $0x30] sm:$0xff]  }
  0xd5   :  { %2073 = vmatprep.subr.bf16.mxu0 %v2129_v32 }
  0xd6   :  { %1930 = vmatpush3.bf16.msra.mxu1 %v2146_v53 }
  0xd7   :  { %1931 = vmatprep.subr.bf16.mxu1 %v2149_v54 }
  0xd8   :  { %2074 = vmatpush3.bf16.msra.mxu0 %v2129_v32  ;;  %v2162_v32 = vld [vmem:[#allocation9 + $0xf8] sm:$0xff]  }
  0xd9   :  { %2075 = vmatprep.subr.bf16.mxu0 %v2130_v33 }
  0xda   :  { %1932 = vmatpush3.bf16.msra.mxu1 %v2150_v56 }
  0xdb   :  { %1933 = vmatprep.subr.bf16.mxu1 %v2153_v30 }
  0xdc   :  { %2076 = vmatpush3.bf16.msra.mxu0 %v2130_v33 }
  0xdd   :  { %1949 = vmatprep.subr.bf16.mxu0 %v2135_v38 }
  0xde   :  { %1934 = vmatpush3.bf16.msra.mxu1 %v2154_v31  ;;  %v2169_v31 = vld [vmem:[#allocation9 + $0x150] sm:$0xff]  }
  0xdf   :  { %2078 = vmatmul.mubr.bf16.vlgmr.msra.gmra.mrb[8].mxu0 %v212_v34  ;;  %v2164_v34 = vld [vmem:[#allocation9 + $0xb8] sm:$0xff]   ;;  %1935 = vmatprep.subr.bf16.mxu1 %v2157_v37  ;;  %v2170_v37 = vld [vmem:[#allocation9 + $0x110] sm:$0xff]  }
  0xe0   :  { %1950 = vmatpush3.bf16.msra.mxu0 %v2136_v39 }
  0xe1   :  { %1951 = vmatprep.subr.bf16.mxu0 %v2139_v40  ;;  %v2158_v40 = vld [vmem:[#allocation9 + $0x38] sm:$0xff]  }
  0xe2   :  { %1936 = vmatpush3.bf16.msra.mxu1 %v2158_v40  ;;  %v2180_v40 = vld [vmem:[#allocation9 + $0x198] sm:$0xff]  }
  0xe4   :  { %1952 = vmatpush3.bf16.msra.mxu0 %v2140_v43  ;;  %v2167_v43 = vld [vmem:[#allocation9 + $0x1c0] sm:$0xff]  }
  0xe5   :  { %1953 = vmatprep.subr.bf16.mxu0 %v2143_v44 }
  0xe8   :  { %1954 = vmatpush3.bf16.msra.mxu0 %v2144_v47  ;;  %v2161_v47 = vld [vmem:[#allocation9 + $0x140] sm:$0xff]  }
  0xe9   :  { %1955 = vmatprep.subr.bf16.mxu0 %v2147_v48  ;;  %1977 = vmatprep.subr.bf16.mxu1 %v2161_v47  ;;  %v2177_v47 = vld [vmem:[#allocation9 + $0x160] sm:$0xff]  }
  0xec   :  { %1956 = vmatpush3.bf16.msra.mxu0 %v2148_v51 }
  0xed   :  { %1957 = vmatprep.subr.bf16.mxu0 %v2151_v52 }
  0xf0   :  { %1958 = vmatpush3.bf16.msra.mxu0 %v2152_v55 }
  0xf1   :  { %1959 = vmatprep.subr.bf16.mxu0 %v2155_v26 }
  0xf4   :  { %1960 = vmatpush3.bf16.msra.mxu0 %v2156_v27  ;;  %v1774_v27 = vld [vmem:[%s2519_s4] ss:$0 sm:$0xff]  ;;  %s2315_s4 = smov [#allocation10]  }
  0xf5   :  { %1961 = vmatprep.subr.bf16.mxu0 %v2159_v28  ;;  %s1720_s9 = sshll.u32 %s2315_s4, 4  ;;  %s1721_s9 = int_to_ptr.vmem [resolvable:$true] %s1720_s9 }
  0xf6   :  { %s2278_s10 = scalar_lea.vmem %s1721_s9, 512  ;;  %p2283_p11 = scmp.lt.s32.totalorder %s1721_s9, %s1721_s9 }
  0xf7   :  { %p2279_p10 = scmp.ne.s32.totalorder %s1721_s9, %s2278_s10  ;;  %p2284_p12 = scmp.lt.s32.totalorder %s2278_s10, %s2278_s10 }
  0xf8   :  { %1962 = vmatpush3.bf16.msra.mxu0 %v2160_v29  ;;  %v2166_v29 = vld [vmem:[#allocation9 + $0x108] sm:$0xff]  }
  0xf9   :  { %1963 = vmatprep.subr.bf16.mxu0 %v2162_v32  ;;  %v2176_v32 = vld [vmem:[#allocation9 + $0x190] sm:$0xff]   ;;  %p2285_p13 = por %p2284_p12, %p2283_p11 }
  0xfb   :  { %p2286_p0 = pnand %p2285_p13, %p2279_p10 }
  0xfc   :  { %1964 = vmatpush3.bf16.msra.mxu0 %v2164_v34 }
  0xfd   :  { %2005 = vmatprep.subr.bf16.mxu0 %v2167_v43 }
 0x192   :  { %v1871_v57 = vpop.f32.mrb[0].mxu0 }
 0x193   :  { %v1872_v58 = vpop.f32.mrb[1].mxu0 }
 0x194   :  { %v1873_v59 = vadd.f32 %v1872_v58, %v1871_v57  ;;  %v1874_v60 = vpop.f32.mrb[2].mxu0 }
 0x195   :  { %v1875_v61 = vpop.f32.mrb[3].mxu0 }
 0x196   :  { %v1876_v63 = vadd.f32 %v1875_v61, %v1874_v60  ;;  %v575_v2 = vadd.f32 %v1873_v59, %v1733_v62 }
 0x197   :  { %v1899_v0 = vpop.f32.mrb[0].mxu1 }
 0x198   :  { %v1900_v1 = vpop.f32.mrb[1].mxu1  ;;  %v578_v7 = vadd.f32 %v1876_v63, %v1733_v62 }
 0x199   :  { %v1901_v3 = vadd.f32 %v1900_v1, %v1899_v0  ;;  %v1902_v4 = vpop.f32.mrb[2].mxu1 }
 0x19a   :  { %v1903_v5 = vpop.f32.mrb[3].mxu1  ;;  %v1877_v6 = vpop.f32.mrb[4].mxu0 }
 0x19b   :  { %v1904_v8 = vadd.f32 %v1903_v5, %v1902_v4  ;;  %v1878_v9 = vpop.f32.mrb[5].mxu0  ;;  %v624_v10 = vadd.f32 %v1901_v3, %v575_v2 }
 0x19c   :  { %v1879_v11 = vadd.f32 %v1878_v9, %v1877_v6  ;;  %v1880_v12 = vpop.f32.mrb[6].mxu0  ;;  %v2201_v6 = vld [vmem:[#allocation9 + $0x258] sm:$0xff]  }
 0x19d   :  { %v1881_v13 = vpop.f32.mrb[7].mxu0  ;;  %v627_v14 = vadd.f32 %v1904_v8, %v578_v7 }
 0x19e   :  { %v1882_v15 = vadd.f32 %v1881_v13, %v1880_v12  ;;  %v583_v16 = vadd.f32 %v1879_v11, %v1733_v62  ;;  %v2445_v11 = vld [vmem:[#allocation3 + $0x40] sm:$0xff] }
 0x19f   :  { %v1905_v17 = vpop.f32.mrb[4].mxu1 }
 0x1a0   :  { %v1906_v18 = vpop.f32.mrb[5].mxu1  ;;  %v586_v19 = vadd.f32 %v1882_v15, %v1733_v62 }
 0x1a1   :  { %v1907_v20 = vadd.f32 %v1906_v18, %v1905_v17  ;;  %v1908_v21 = vpop.f32.mrb[6].mxu1  ;;  %v2172_v17 = vld [vmem:[#allocation9 + $0x188] sm:$0xff]  }
 0x1a2   :  { %v1909_v22 = vpop.f32.mrb[7].mxu1 }
 0x1a3   :  { %v1910_v23 = vadd.f32 %v1909_v22, %v1908_v21  ;;  %v632_v24 = vadd.f32 %v1907_v20, %v583_v16  ;;  %v2163_v16 = vld [vmem:[#allocation9 + $0x100] sm:$0xff]   ;;  %v2165_v21 = vld [vmem:[#allocation9 + $0x148] sm:$0xff]  }
 0x1a5   :  { %v635_v25 = vadd.f32 %v1910_v23, %v586_v19 }
 0x1b2   :  { %v2079_v33 = vpop.f32.mrb[8].mxu0 }
 0x1b3   :  { %v681_v35 = vadd.f32 %v2079_v33, %v632_v24  ;;  %v672_v36 = vpop.f32.mrb[9].mxu0 }
 0x1b4   :  { %v673_v38 = vadd.f32 %v672_v36, %v624_v10  ;;  %v2080_v39 = vpop.f32.mrb[10].mxu0  ;;  %v2168_v10 = vld [vmem:[#allocation9 + $0x180] sm:$0xff]  }
 0x1b5   :  { %v684_v41 = vadd.f32 %v2080_v39, %v635_v25  ;;  %v675_v42 = vpop.f32.mrb[11].mxu0  ;;  %v689_v45 = vmax.f32 %v681_v35, 0.0  ;;  %v2175_v25 = vld [vmem:[#allocation9 + $0x1d0] sm:$0xff]   ;;  %v2179_v35 = vld [vmem:[#allocation9 + $0x1d8] sm:$0xff]  }
 0x1b6   :  { %v676_v44 = vadd.f32 %v675_v42, %v627_v14  ;;  %v687_v48 = vmax.f32 %v673_v38, 0.0  ;;  %v2171_v14 = vld [vmem:[#allocation9 + $0x1c8] sm:$0xff]   ;;  %v2173_v39 = vld [vmem:[#allocation9 + $0x158] sm:$0xff]  }
 0x1b7   :  { %v690_v46 = vmax.f32 %v684_v41, 0.0 }
 0x1b8   :  { %v688_v49 = vmax.f32 %v676_v44, 0.0  ;;  %v2183_v44 = vld [vmem:[#allocation9 + $0x1e0] sm:$0xff]  }
 0x1b9   :  { %v692_v50 = vpack.c.bf16 %v690_v46, %v689_v45  ;;  %v2174_v46 = vld [vmem:[#allocation9 + $0x118] sm:$0xff]  }
 0x1ba   :  { %v691_v51 = vpack.c.bf16 %v688_v49, %v687_v48  ;;  %v2184_v48 = vld [vmem:[#allocation9 + $0x1a0] sm:$0xff]   ;;  %v2187_v49 = vld [vmem:[#allocation9 + $0x1e8] sm:$0xff]  }
 0x1bb   :  { %v751_v52 = vrot.slane %v692_v50, 7  ;;  %v758_v55 = vshrl.u32 %v692_v50, 16  ;;  %v761_v60 = vshll.u32 %v692_v50, 16  ;;  %v789_v2 = vrot.slane %v692_v50, 1 }
 0x1bc   :  { %v694_v53 = vrot.slane %v691_v51, 7  ;;  %v703_v54 = vshrl.u32 %v691_v51, 16  ;;  %v706_v57 = vshll.u32 %v691_v51, 16  ;;  %v742_v63 = vrot.slane %v691_v51, 1 }
 0x1bd   :  { %752 = vrot.lane.b32.xlu1 %v751_v52, %s2314_s2  ;;  %v760_v59 = vrot.slane %v758_v55, 7  ;;  %v778_v1 = vrot.slane %v761_v60, 1  ;;  %v2188_v52 = vld [vmem:[#allocation9 + $0x1a8] sm:$0xff]  }
 0x1be   :  { %695 = vrot.lane.b32.xlu0 %v694_v53, %s2314_s2  ;;  %v705_v56 = vrot.slane %v703_v54, 7  ;;  %v729_v62 = vrot.slane %v706_v57, 1  ;;  %v2191_v53 = vld [vmem:[#allocation9 + $0x1f0] sm:$0xff]  }
 0x1bf   :  { %v763_v61 = vor.u32 %v761_v60, %v760_v59  ;;  %v779_v3 = vor.u32 %v778_v1, %v758_v55  ;;  %v2185_v55 = vld [vmem:[#allocation9 + $0x170] sm:$0xff]   ;;  %v2189_v59 = vld [vmem:[#allocation9 + $0x178] sm:$0xff]  }
 0x1c0   :  { %v708_v58 = vor.u32 %v706_v57, %v705_v56  ;;  %v730_v0 = vor.u32 %v729_v62, %v703_v54  ;;  %v2182_v54 = vld [vmem:[#allocation9 + $0x128] sm:$0xff]   ;;  %v2192_v56 = vld [vmem:[#allocation9 + $0x1b0] sm:$0xff]   ;;  %v2194_v57 = vld [vmem:[#allocation9 + $0x1f8] sm:$0xff]  }
 0x1c1   :  { %722 = vrot.lane.b32.xlu1 %v691_v51, %s2314_s2  ;;  %v2181_v51 = vld [vmem:[#allocation9 + $0x168] sm:$0xff]   ;;  %v2196_v60 = vld [vmem:[#allocation9 + $0x1b8] sm:$0xff]   ;;  %v2193_v62 = vld [vmem:[#allocation9 + $0x240] sm:$0xff]  }
 0x1c2   :  { %709 = vrot.lane.b32.xlu0 %v708_v58, %s2314_s2  ;;  %v2186_v58 = vld [vmem:[#allocation9 + $0x130] sm:$0xff]  }
 0x1c5   :  { %773 = vrot.lane.b32.xlu1 %v692_v50, %s2314_s2  ;;  %v2178_v50 = vld [vmem:[#allocation9 + $0x120] sm:$0xff]  }
 0x1c6   :  { %764 = vrot.lane.b32.xlu0 %v763_v61, %s2314_s2  ;;  %v2190_v61 = vld [vmem:[#allocation9 + $0x138] sm:$0xff]  }
 0x1c9   :  { %743 = vrot.lane.b32.xlu1 %v742_v63, %s2314_s2  ;;  %v2195_v63 = vld [vmem:[#allocation9 + $0x200] sm:$0xff]  }
 0x1ca   :  { %731 = vrot.lane.b32.xlu0 %v730_v0, %s2314_s2  ;;  %v2197_v0 = vld [vmem:[#allocation9 + $0x248] sm:$0xff]  }
 0x1cd   :  { %790 = vrot.lane.b32.xlu1 %v789_v2, %s2314_s2 }
 0x1ce   :  { %780 = vrot.lane.b32.xlu0 %v779_v3, %s2314_s2  ;;  %v2198_v3 = vld [vmem:[#allocation9 + $0x208] sm:$0xff]  }
 0x22f   :  { %v753_v4 = vpop.permute.xlu1 %752 }
 0x230   :  { %755 = vst.msk [vmem:[#allocation3 + $0x50] sm:$0xfe] %vm698_vm7, %v753_v4  ;;  %v696_v5 = vpop.permute.xlu0 %695 }
 0x231   :  { %756 = vst.msk [vmem:[#allocation3 + $0x58] sm:$0xfe] %vm700_vm8, %v753_v4  ;;  %701 = vst.msk [vmem:[#allocation3 + $0x8] sm:$0xfe] %vm700_vm8, %v696_v5  ;;  %v2199_v4 = vld [vmem:[#allocation9 + $0x250] sm:$0xff]  }
 0x232   :  { %699 = vst.msk [vmem:[#allocation3] sm:$0xfe] %vm698_vm7, %v696_v5  ;;  %v2200_v5 = vld [vmem:[#allocation9 + $0x210] sm:$0xff]  }
 0x233   :  { %v723_v8 = vpop.permute.xlu1 %722 }
 0x234   :  { %726 = vst.msk [vmem:[#allocation3 + $0x20] sm:$0xff] %vm712_vm9, %v723_v8  ;;  %v710_v9 = vpop.permute.xlu0 %709 }
 0x235   :  { %728 = vst.msk [vmem:[#allocation3 + $0x28] sm:$0xff] %vm717_vm10, %v723_v8  ;;  %v715_v12 = vsel %vm2433_vm11, %v710_v9, %v2445_v11  ;;  %v720_v13 = vsel %vm2439_vm12, %v710_v9, %v2445_v11  ;;  %v2202_v9 = vld [vmem:[#allocation9 + $0x218] sm:$0xff]  }
 0x236   :  { %1543 = vmatprep.mubr.bf16.mxu0 %v720_v13  ;;  %v2206_v13 = vld [vmem:[#allocation9 + $0x228] sm:$0xff]  }
 0x237   :  { %v774_v15 = vpop.permute.xlu1 %773  ;;  %1544 = vmatmul.mubr.bf16.vlgmr.msra.gmra.mrb[12].mxu0 %v715_v12  ;;  %v805_v43 = vld [vmem:[#allocation3 + $0x50] sm:$0xff]  ;;  %v2205_v12 = vld [vmem:[#allocation9 + $0x268] sm:$0xff]  }
 0x238   :  { %776 = vst.msk [vmem:[#allocation3 + $0x70] sm:$0xff] %vm712_vm9, %v774_v15  ;;  %v765_v18 = vpop.permute.xlu0 %764  ;;  %v796_v19 = vld [vmem:[#allocation3 + $0x8] sm:$0xff]  ;;  %2006 = vmatpush3.bf16.msra.mxu0 %v2168_v10  ;;  %v806_v26 = vld [vmem:[#allocation3 + $0x58] sm:$0xff]  ;;  %v2203_v10 = vld [vmem:[#allocation9 + $0x260] sm:$0xff]  }
 0x239   :  { %777 = vst.msk [vmem:[#allocation3 + $0x78] sm:$0xff] %vm717_vm10, %v774_v15  ;;  %v795_v20 = vld [vmem:[#allocation3] sm:$0xff]  ;;  %v768_v22 = vsel %vm2433_vm11, %v765_v18, %v2445_v11  ;;  %v771_v23 = vsel %vm2439_vm12, %v765_v18, %v2445_v11  ;;  %1494 = vmatprep.mubr.bf16.mxu1 %v796_v19  ;;  %2007 = vmatprep.subr.bf16.mxu0 %v2171_v14  ;;  %v2207_v14 = vld [vmem:[#allocation9 + $0x270] sm:$0xff]  }
 0x23a   :  { %1495 = vmatmul.mubr.bf16.vlgmr.msra.gmra.mrb[8].mxu1 %v795_v20  ;;  %1551 = vmatprep.mubr.bf16.mxu0 %v771_v23  ;;  %v2208_v15 = vld [vmem:[#allocation9 + $0x230] sm:$0xff]  }
 0x23b   :  { %1978 = vmatpush3.bf16.msra.mxu1 %v2163_v16  ;;  %v744_v28 = vpop.permute.xlu1 %743  ;;  %1502 = vmatprep.mubr.bf16.mxu1 %v806_v26  ;;  %v799_v1 = vld [vmem:[#allocation3 + $0x20] sm:$0xff]  ;;  %v2209_v16 = vld [vmem:[#allocation9 + $0x278] sm:$0xff]  }
 0x23c   :  { %747 = vst.msk [vmem:[#allocation3 + $0x40] sm:$0x7f] %vm746_vm13, %v744_v28  ;;  %v2475_v30 = vpop.permute.xlu0 %731  ;;  %1979 = vmatprep.subr.bf16.mxu1 %v2165_v21  ;;  %2008 = vmatpush3.bf16.msra.mxu0 %v2172_v17  ;;  %v800_v45 = vld [vmem:[#allocation3 + $0x28] sm:$0xff]  ;;  %v2210_v17 = vld [vmem:[#allocation9 + $0x238] sm:$0xff]  }
 0x23d   :  { %749 = vst.msk [vmem:[#allocation3 + $0x48] sm:$0x7f] %vm748_vm14, %v744_v28  ;;  %v736_v33 = vsel %vm2463_vm15, %v2475_v30, %v2445_v11  ;;  %v740_v34 = vsel %vm2469_vm0, %v2475_v30, %v2445_v11  ;;  %2009 = vmatprep.subr.bf16.mxu0 %v2175_v25 }
 0x23f   :  { %1980 = vmatpush3.bf16.msra.mxu1 %v2166_v29  ;;  %v791_v36 = vpop.permute.xlu1 %790  ;;  %1552 = vmatmul.mubr.bf16.gmra.mrb[16].mxu0 %v768_v22  ;;  %v809_v7 = vld [vmem:[#allocation3 + $0x70] sm:$0xff] }
 0x240   :  { %793 = vst.msk [vmem:[#allocation3 + $0x90] sm:$0x7f] %vm746_vm13, %v791_v36  ;;  %v2487_v38 = vpop.permute.xlu0 %780  ;;  %1981 = vmatprep.subr.bf16.mxu1 %v2169_v31  ;;  %2010 = vmatpush3.bf16.msra.mxu0 %v2176_v32  ;;  %v810_v2 = vld [vmem:[#allocation3 + $0x78] sm:$0xff] }
 0x241   :  { %794 = vst.msk [vmem:[#allocation3 + $0x98] sm:$0x7f] %vm748_vm14, %v791_v36  ;;  %v784_v41 = vsel %vm2463_vm15, %v2487_v38, %v2445_v11  ;;  %v787_v42 = vsel %vm2469_vm0, %v2487_v38, %v2445_v11  ;;  %1641 = vmatprep.mubr.bf16.mxu0 %v740_v34  ;;  %2011 = vmatprep.subr.bf16.mxu0 %v2179_v35  ;;  %v2204_v11 = vld [vmem:[#allocation9 + $0x220] sm:$0xff]  }
 0x242   :  { %1503 = vmatmul.mubr.bf16.gmra.mrb[12].mxu1 %v805_v43 }
 0x243   :  { %1982 = vmatpush3.bf16.msra.mxu1 %v2170_v37  ;;  %1592 = vmatprep.mubr.bf16.mxu1 %v800_v45  ;;  %v803_v18 = vld [vmem:[#allocation3 + $0x40] sm:$0xff] }
 0x244   :  { %1983 = vmatprep.subr.bf16.mxu1 %v2173_v39  ;;  %2012 = vmatpush3.bf16.msra.mxu0 %v2180_v40  ;;  %v804_v8 = vld [vmem:[#allocation3 + $0x48] sm:$0xff] }
 0x245   :  { %2013 = vmatprep.subr.bf16.mxu0 %v2183_v44 }
 0x247   :  { %1984 = vmatpush3.bf16.msra.mxu1 %v2174_v46  ;;  %v813_v20 = vld [vmem:[#allocation3 + $0x90] sm:$0xff] }
 0x248   :  { %1985 = vmatprep.subr.bf16.mxu1 %v2177_v47  ;;  %2014 = vmatpush3.bf16.msra.mxu0 %v2184_v48  ;;  %v814_v19 = vld [vmem:[#allocation3 + $0x98] sm:$0xff] }
 0x249   :  { %2015 = vmatprep.subr.bf16.mxu0 %v2187_v49 }
 0x24b   :  { %1986 = vmatpush3.bf16.msra.mxu1 %v2178_v50 }
 0x24c   :  { %1987 = vmatprep.subr.bf16.mxu1 %v2181_v51  ;;  %2016 = vmatpush3.bf16.msra.mxu0 %v2188_v52 }
 0x24d   :  { %2017 = vmatprep.subr.bf16.mxu0 %v2191_v53 }
 0x24f   :  { %1988 = vmatpush3.bf16.msra.mxu1 %v2182_v54 }
 0x250   :  { %1989 = vmatprep.subr.bf16.mxu1 %v2185_v55  ;;  %2018 = vmatpush3.bf16.msra.mxu0 %v2192_v56 }
 0x251   :  { %2019 = vmatprep.subr.bf16.mxu0 %v2194_v57 }
 0x253   :  { %1990 = vmatpush3.bf16.msra.mxu1 %v2186_v58 }
 0x254   :  { %1991 = vmatprep.subr.bf16.mxu1 %v2189_v59  ;;  %2020 = vmatpush3.bf16.msra.mxu0 %v2196_v60 }
 0x257   :  { %1992 = vmatpush3.bf16.msra.mxu1 %v2190_v61  ;;  %1642 = vmatmul.mubr.bf16.vlgmr.msra.gmra.mrb[20].mxu0 %v736_v33 }
 0x258   :  { %2033 = vmatprep.subr.bf16.mxu1 %v2193_v62  ;;  %1649 = vmatprep.mubr.bf16.mxu0 %v787_v42 }
 0x25a   :  { %1593 = vmatmul.mubr.bf16.vlgmr.msra.gmra.mrb[16].mxu1 %v799_v1 }
 0x25b   :  { %1600 = vmatprep.mubr.bf16.mxu1 %v810_v2  ;;  %2034 = vmatpush3.bf16.msra.mxu1 %v2195_v63 }
 0x25c   :  { %2035 = vmatprep.subr.bf16.mxu1 %v2197_v0 }
 0x25f   :  { %2036 = vmatpush3.bf16.msra.mxu1 %v2198_v3  ;;  %1650 = vmatmul.mubr.bf16.gmra.mrb[24].mxu0 %v784_v41 }
 0x260   :  { %2037 = vmatprep.subr.bf16.mxu1 %v2199_v4 }
 0x262   :  { %1601 = vmatmul.mubr.bf16.gmra.mrb[20].mxu1 %v809_v7 }
 0x263   :  { %2038 = vmatpush3.bf16.msra.mxu1 %v2200_v5  ;;  %1690 = vmatprep.mubr.bf16.mxu1 %v804_v8 }
 0x264   :  { %2039 = vmatprep.subr.bf16.mxu1 %v2201_v6 }
 0x267   :  { %2040 = vmatpush3.bf16.msra.mxu1 %v2202_v9 }
 0x268   :  { %2041 = vmatprep.subr.bf16.mxu1 %v2203_v10 }
 0x26b   :  { %2042 = vmatpush3.bf16.msra.mxu1 %v2204_v11 }
 0x26c   :  { %2043 = vmatprep.subr.bf16.mxu1 %v2205_v12 }
 0x26f   :  { %2044 = vmatpush3.bf16.msra.mxu1 %v2206_v13 }
 0x270   :  { %2045 = vmatprep.subr.bf16.mxu1 %v2207_v14 }
 0x273   :  { %2046 = vmatpush3.bf16.msra.mxu1 %v2208_v15 }
 0x274   :  { %2047 = vmatprep.subr.bf16.mxu1 %v2209_v16 }
 0x277   :  { %2048 = vmatpush3.bf16.msra.mxu1 %v2210_v17 }
 0x27a   :  { %1691 = vmatmul.mubr.bf16.vlgmr.msra.gmra.mrb[24].mxu1 %v803_v18 }
 0x27b   :  { %1698 = vmatprep.mubr.bf16.mxu1 %v814_v19 }
 0x282   :  { %1699 = vmatmul.mubr.bf16.gmra.mrb[28].mxu1 %v813_v20 }
 0x30a   :  { %v1965_v21 = vpop.f32.mrb[12].mxu0 }
 0x30b   :  { %v1966_v22 = vpop.f32.mrb[13].mxu0 }
 0x30c   :  { %v1967_v23 = vadd.f32 %v1966_v22, %v1965_v21  ;;  %v1968_v24 = vpop.f32.mrb[14].mxu0 }
 0x30d   :  { %v1937_v25 = vpop.f32.mrb[8].mxu1  ;;  %v1969_v26 = vpop.f32.mrb[15].mxu0 }
 0x30e   :  { %v1938_v28 = vpop.f32.mrb[9].mxu1  ;;  %v1970_v29 = vadd.f32 %v1969_v26, %v1968_v24 }
 0x30f   :  { %v1939_v30 = vadd.f32 %v1938_v28, %v1937_v25  ;;  %v1940_v31 = vpop.f32.mrb[10].mxu1 }
 0x310   :  { %v1941_v32 = vpop.f32.mrb[11].mxu1 }
 0x311   :  { %v1497_v33 = vadd.f32 %v1939_v30, %v1774_v27  ;;  %v1942_v34 = vadd.f32 %v1941_v32, %v1940_v31 }
 0x312   :  { %v1971_v35 = vpop.f32.mrb[16].mxu0 }
 0x313   :  { %v1500_v36 = vadd.f32 %v1942_v34, %v1774_v27  ;;  %v1546_v37 = vadd.f32 %v1967_v23, %v1497_v33  ;;  %v1972_v38 = vpop.f32.mrb[17].mxu0 }
 0x314   :  { %v1973_v39 = vadd.f32 %v1972_v38, %v1971_v35  ;;  %v1974_v40 = vpop.f32.mrb[18].mxu0 }
 0x315   :  { %v1943_v41 = vpop.f32.mrb[12].mxu1  ;;  %v1549_v42 = vadd.f32 %v1970_v29, %v1500_v36  ;;  %v1975_v43 = vpop.f32.mrb[19].mxu0 }
 0x316   :  { %v1944_v44 = vpop.f32.mrb[13].mxu1  ;;  %v1976_v45 = vadd.f32 %v1975_v43, %v1974_v40 }
 0x317   :  { %v1945_v46 = vadd.f32 %v1944_v44, %v1943_v41  ;;  %v1946_v47 = vpop.f32.mrb[14].mxu1 }
 0x318   :  { %v1947_v48 = vpop.f32.mrb[15].mxu1 }
 0x319   :  { %v1505_v49 = vadd.f32 %v1945_v46, %v1774_v27  ;;  %v1948_v50 = vadd.f32 %v1947_v48, %v1946_v47 }
 0x31b   :  { %v1508_v51 = vadd.f32 %v1948_v50, %v1774_v27  ;;  %v1554_v52 = vadd.f32 %v1973_v39, %v1505_v49 }
 0x31d   :  { %v1557_v53 = vadd.f32 %v1976_v45, %v1508_v51 }
 0x32a   :  { %v2021_v54 = vpop.f32.mrb[20].mxu0 }
 0x32b   :  { %v2022_v55 = vpop.f32.mrb[21].mxu0 }
 0x32c   :  { %v2023_v56 = vadd.f32 %v2022_v55, %v2021_v54  ;;  %v2024_v57 = vpop.f32.mrb[22].mxu0 }
 0x32d   :  { %v1993_v58 = vpop.f32.mrb[16].mxu1  ;;  %v2025_v59 = vpop.f32.mrb[23].mxu0 }
 0x32e   :  { %v1994_v60 = vpop.f32.mrb[17].mxu1  ;;  %v2026_v61 = vadd.f32 %v2025_v59, %v2024_v57 }
 0x32f   :  { %v1995_v62 = vadd.f32 %v1994_v60, %v1993_v58  ;;  %v1996_v63 = vpop.f32.mrb[18].mxu1 }
 0x330   :  { %v1997_v0 = vpop.f32.mrb[19].mxu1 }
 0x331   :  { %v1595_v1 = vadd.f32 %v1995_v62, %v1546_v37  ;;  %v1998_v2 = vadd.f32 %v1997_v0, %v1996_v63 }
 0x332   :  { %v2027_v3 = vpop.f32.mrb[24].mxu0 }
 0x333   :  { %v1598_v4 = vadd.f32 %v1998_v2, %v1549_v42  ;;  %v1644_v5 = vadd.f32 %v2023_v56, %v1595_v1  ;;  %v2028_v6 = vpop.f32.mrb[25].mxu0 }
 0x334   :  { %v2029_v7 = vadd.f32 %v2028_v6, %v2027_v3  ;;  %v2030_v8 = vpop.f32.mrb[26].mxu0 }
 0x335   :  { %v1999_v9 = vpop.f32.mrb[20].mxu1  ;;  %v1647_v10 = vadd.f32 %v2026_v61, %v1598_v4  ;;  %v2031_v11 = vpop.f32.mrb[27].mxu0 }
 0x336   :  { %v2000_v12 = vpop.f32.mrb[21].mxu1  ;;  %v2032_v13 = vadd.f32 %v2031_v11, %v2030_v8 }
 0x337   :  { %v2001_v14 = vadd.f32 %v2000_v12, %v1999_v9  ;;  %v2002_v15 = vpop.f32.mrb[22].mxu1 }
 0x338   :  { %v2003_v16 = vpop.f32.mrb[23].mxu1 }
 0x339   :  { %v1603_v17 = vadd.f32 %v2001_v14, %v1554_v52  ;;  %v2004_v18 = vadd.f32 %v2003_v16, %v2002_v15 }
 0x33b   :  { %v1606_v19 = vadd.f32 %v2004_v18, %v1557_v53  ;;  %v1652_v20 = vadd.f32 %v2029_v7, %v1603_v17 }
 0x33d   :  { %v1655_v21 = vadd.f32 %v2032_v13, %v1606_v19 }
 0x34d   :  { %v2049_v22 = vpop.f32.mrb[24].mxu1 }
 0x34e   :  { %v2050_v23 = vpop.f32.mrb[25].mxu1 }
 0x34f   :  { %v2051_v24 = vadd.f32 %v2050_v23, %v2049_v22  ;;  %v2052_v25 = vpop.f32.mrb[26].mxu1 }
 0x350   :  { %v2053_v26 = vpop.f32.mrb[27].mxu1 }
 0x351   :  { %v1693_v27 = vadd.f32 %v2051_v24, %v1644_v5  ;;  %v2054_v28 = vadd.f32 %v2053_v26, %v2052_v25 }
 0x353   :  { %v1707_v29 = vmax.f32 %v1693_v27, 0.0  ;;  %v1696_v30 = vadd.f32 %v2054_v28, %v1647_v10 }
 0x355   :  { %1711 = vst [vmem:[#allocation10] sm:$0xff] %v1707_v29  ;;  %v1708_v31 = vmax.f32 %v1696_v30, 0.0  ;;  %v2055_v32 = vpop.f32.mrb[28].mxu1 }
 0x356   :  { %v2056_v33 = vpop.f32.mrb[29].mxu1 }
 0x357   :  { %1712 = vst [vmem:[#allocation10 + $0x8] sm:$0xff] %v1708_v31  ;;  %v2057_v34 = vadd.f32 %v2056_v33, %v2055_v32  ;;  %v2058_v35 = vpop.f32.mrb[30].mxu1 }
 0x358   :  { %v2059_v36 = vpop.f32.mrb[31].mxu1 }
 0x359   :  { %v1701_v37 = vadd.f32 %v2057_v34, %v1652_v20  ;;  %v2060_v38 = vadd.f32 %v2059_v36, %v2058_v35 }
 0x35b   :  { %v1709_v39 = vmax.f32 %v1701_v37, 0.0  ;;  %v1704_v40 = vadd.f32 %v2060_v38, %v1655_v21 }
 0x35d   :  { %1713 = vst [vmem:[#allocation10 + $0x10] sm:$0xff] %v1709_v39  ;;  %v1710_v41 = vmax.f32 %v1704_v40, 0.0 }
 0x35f   :  { %1714 = vst [vmem:[#allocation10 + $0x18] sm:$0xff] %v1710_v41 }
 0x360   :  { %2289 = shalt.err (!%p2286_p0)
}
 0x361   :  { %s2290_s13 = scalar_lea.hbm %s2520_s5, 512 }
 0x362   :  { %p2291_p1 = scmp.ne.s32.totalorder %s2520_s5, %s2290_s13  ;;  %p2294_p2 = scmp.lt.u32.totalorder %s2290_s13, %s2520_s5 }
 0x364   :  { %p2296_p3 = pnand %p2294_p2, %p2291_p1 }
 0x366   :  { %2299 = shalt.err (!%p2296_p3)
}
 0x367   :  { %1726 = dma.vmem_to_hbm [thread:$0]  %s1721_s9, 512, %s2520_s5, [#allocation6], %s2310_s1, %s2310_s1, %s2311_s17  }
 0x368   :  { %2304 = dma.done.wait [#allocation6], 512  }
 0x369   :  { %2305 = vsyncadd [#allocation6], 4294966784 }
 0x36a   :  { %1730 = vsyncpa [#allocation5], 1 }
 0x36b   :  { %1731 = vsyncpa [#allocation8], 1 }
 0x36c   :  { %1732 = vsyncpa [#allocation6], 1 }

</bundles_post_ra>
